<compile_context>
chip_gen: v7x
topology: tpu7x:2x2x1
jax: 0.10.0
libtpu: 0.0.40
codegen_flags: <defaults>
</compile_context>

<pallas_src>
from functools import partial

import jax
import jax.numpy as jnp
from jax.experimental import pallas as pl
from jax.experimental.pallas import tpu as pltpu


def _round_up(x, m):
    return ((x + m - 1) // m) * m


def _default_hidden_dtype():
    """bf16 hidden math on v6e/v7x (bf16 VPU/EUP); f32 on v5e and older."""
    try:
        kind = jax.devices()[0].device_kind.lower()
    except Exception:  # pragma: no cover - defensive
        return jnp.float32
    if "tpu" not in kind:
        return jnp.float32
    for old in ("v2", "v3", "v4", "v5"):
        if old in kind:
            return jnp.float32
    return jnp.bfloat16


def _vnet_kernel(t_ref, x_ref, w1x_ref, w1t_ref, b1_ref,
                 w2_ref, b2_ref, w3_ref, b3_ref, wl_ref, bl_ref, o_ref,
                 *, hidden_dtype):
    """One batch tile, feature-major: batch on lanes, features on sublanes.

    t_ref : (1,  TB) f32      x_ref : (dim, TB) f32
    w1x   : (ns, dim) bf16    w1t/b1/wl : (ns, 1) f32   bl : (1, 1) f32
    w2/w3 : (ns, ns) bf16 (hh folded)   b2/b3 : (ns, 1) hidden_dtype
    o_ref : (1,  TB) f32
    """
    t = t_ref[...]                       # (1, TB)   f32, lane-dense
    x = x_ref[...]                       # (dim, TB) f32

    # lin1 on concat([t, x]): the concat never materializes.
    #   W1x^T @ x^T  -> MXU (bf16 operands, f32 accumulation)
    #   w1t * t      -> lane-dense rank-1 VPU term
    pre = jnp.dot(w1x_ref[...], x.astype(jnp.bfloat16),
                  preferred_element_type=jnp.float32)
    pre = pre + w1t_ref[...] * t + b1_ref[...]
    h = jnp.tanh(pre.astype(hidden_dtype))

    # residual block 2 (hh already folded into w2/b2); adds+tanh in hidden_dtype
    d = jnp.dot(w2_ref[...], h.astype(jnp.bfloat16),
                preferred_element_type=jnp.float32)
    h = jnp.tanh(h + d.astype(hidden_dtype) + b2_ref[...])

    # residual block 3 (hh already folded into w3/b3)
    d = jnp.dot(w3_ref[...], h.astype(jnp.bfloat16),
                preferred_element_type=jnp.float32)
    h = jnp.tanh(h + d.astype(hidden_dtype) + b3_ref[...])

    # linlast (ns -> 1): VPU multiply + sublane reduce (skip a 1-row matmul).
    # Padded rows of wl are zero, so they drop out.  f32 for the final math.
    v = jnp.sum(h.astype(jnp.float32) * wl_ref[...],
                axis=0, keepdims=True) + bl_ref[...]          # (1, TB)

    # terminal-condition blend, all lane-dense f32 rows
    e = jnp.exp(t - 1.0)                                      # (1, TB)
    psi = jnp.sum(x * x, axis=0, keepdims=True)               # psi_func(inp)
    o_ref[...] = (1.0 - e) * v + e * psi


def prepare_params(params, hh, hidden_dtype=None):
    """Transpose to feature-major, split w1, fold hh into w2/b2 & w3/b3 and
    zero-pad the hidden width to a multiple of 8 sublanes.  All transforms are
    exact (padded channels stay identically zero through every layer)."""
    if hidden_dtype is None:
        hidden_dtype = _default_hidden_dtype()

    w1, b1 = params["w1"], params["b1"]          # (dim+1, ns), (1, ns)
    w2, b2 = params["w2"], params["b2"]          # (ns, ns),    (1, ns)
    w3, b3 = params["w3"], params["b3"]
    wl, bl = params["wlast"], params["blast"]    # (ns, 1),     (1, 1)
    ns = w1.shape[1]
    ns_pad = _round_up(ns, 8)
    pr = ns_pad - ns
    pad_rows = lambda a: jnp.pad(a, ((0, pr), (0, 0)))

    return dict(
        w1x=pad_rows(w1[1:, :].T).astype(jnp.bfloat16),          # (ns_pad, dim)
        w1t=pad_rows(w1[0:1, :].T).astype(jnp.float32),          # (ns_pad, 1)
        b1=pad_rows(b1.T).astype(jnp.float32),                   # (ns_pad, 1)
        w2=jnp.pad((hh * w2).T, ((0, pr), (0, pr))).astype(jnp.bfloat16),
        b2=pad_rows((hh * b2).T).astype(hidden_dtype),
        w3=jnp.pad((hh * w3).T, ((0, pr), (0, pr))).astype(jnp.bfloat16),
        b3=pad_rows((hh * b3).T).astype(hidden_dtype),
        wl=pad_rows(wl).astype(jnp.float32),                     # (ns_pad, 1)
        bl=bl.astype(jnp.float32),                               # (1, 1)
        hidden_dtype=hidden_dtype,
    )


def _choose_batch_tiling(B, tile_b_max):
    """Pick a lane-axis batch tile (multiple of 128).  Prefer >= 2 evenly
    balanced grid steps when the padded batch allows it (v7x megacore)."""
    b128 = _round_up(B, 128)
    tile_b = max(128, (min(_round_up(tile_b_max, 128), b128) // 128) * 128)
    if b128 >= 2 * 128 and 2 * tile_b > b128:
        tile_b = _round_up(b128 // 2, 128)
    b_pad = _round_up(B, tile_b)
    return tile_b, b_pad


def vnet_forward(t, inp, prep, *, tile_b=1024, hidden_dtype=None):
    """t: (B,1) f32, inp: (B,dim) f32 -> (B,1) f32."""
    if hidden_dtype is None:
        hidden_dtype = prep["hidden_dtype"]
    B, dim = inp.shape
    ns_pad = prep["w2"].shape[0]

    tile_b, b_pad = _choose_batch_tiling(B, tile_b)

    # Feature-major (batch-on-lanes) inputs; ragged batch zero-padded and the
    # output sliced afterwards (no garbage rows escape).
    tT = jnp.pad(t.astype(jnp.float32).T, ((0, 0), (0, b_pad - B)))     # (1, b_pad)
    xT = jnp.pad(inp.astype(jnp.float32).T, ((0, 0), (0, b_pad - B)))   # (dim, b_pad)

    batch_spec = lambda shape: pl.BlockSpec(shape, lambda i: (0, i))
    const_spec = lambda shape: pl.BlockSpec(shape, lambda i: (0, 0))

    # VMEM budget (tile_b=1024, ns_pad=32): activations ~0.3 MiB + weights
    # ~10 KiB, double-buffered -> well inside every generation's default
    # scoped VMEM; no vmem_limit_bytes needed.
    out = pl.pallas_call(
        partial(_vnet_kernel, hidden_dtype=hidden_dtype),
        out_shape=jax.ShapeDtypeStruct((1, b_pad), jnp.float32),
        grid=(b_pad // tile_b,),
        in_specs=[
            batch_spec((1, tile_b)),         # t (row)
            batch_spec((dim, tile_b)),       # x^T
            const_spec((ns_pad, dim)),       # W1x^T
            const_spec((ns_pad, 1)),         # W1t column
            const_spec((ns_pad, 1)),         # b1
            const_spec((ns_pad, ns_pad)),    # hh*W2^T
            const_spec((ns_pad, 1)),         # hh*b2
            const_spec((ns_pad, ns_pad)),    # hh*W3^T
            const_spec((ns_pad, 1)),         # hh*b3
            const_spec((ns_pad, 1)),         # wlast column
            const_spec((1, 1)),              # blast
        ],
        out_specs=batch_spec((1, tile_b)),   # lane-dense output row
        compiler_params=pltpu.CompilerParams(
            dimension_semantics=("parallel",)),
    )(tT, xT, prep["w1x"], prep["w1t"], prep["b1"], prep["w2"], prep["b2"],
      prep["w3"], prep["b3"], prep["wl"], prep["bl"])

    return out[0, :B][:, None]


def init_params(key, dim, ns):
    """Deterministic init (uniform +/- 1/sqrt(fan_in), like nn.Linear)."""
    ks = jax.random.split(key, 8)

    def lin(kw, kb, fan_in, fan_out):
        bound = 1.0 / jnp.sqrt(jnp.float32(fan_in))
        w = jax.random.uniform(kw, (fan_in, fan_out), jnp.float32, -bound, bound)
        b = jax.random.uniform(kb, (1, fan_out), jnp.float32, -bound, bound)
        return w, b

    w1, b1 = lin(ks[0], ks[1], dim + 1, ns)
    w2, b2 = lin(ks[2], ks[3], ns, ns)
    w3, b3 = lin(ks[4], ks[5], ns, ns)
    wl, bl = lin(ks[6], ks[7], ns, 1)
    # TODO(synk): self.lintt (Linear(1, dim)) is unused in forward(); not implemented.
    return dict(w1=w1, b1=b1, w2=w2, b2=b2, w3=w3, b3=b3, wlast=wl, blast=bl)


def vnet_reference(t, inp, params, hh):
    """Pure-JAX f32 reference mirroring the PyTorch forward exactly."""
    out = jnp.concatenate([t, inp], axis=1)
    out = jnp.tanh(out @ params["w1"] + params["b1"])
    out = jnp.tanh(out + hh * (out @ params["w2"] + params["b2"]))
    out = jnp.tanh(out + hh * (out @ params["w3"] + params["b3"]))
    out = out @ params["wlast"] + params["blast"]
    e = jnp.exp(t - 1.0)
    psi = jnp.sum(inp * inp, axis=1, keepdims=True)
    return (1.0 - e) * out + e * psi


def vnet_reference_matched(t, inp, prep):
    """Reference that mirrors the kernel's feature-major / bf16-operand /
    hidden-dtype math exactly, for a tight numerical check."""
    hd = prep["hidden_dtype"]
    tT, xT = t.T, inp.T
    pre = jnp.dot(prep["w1x"], xT.astype(jnp.bfloat16),
                  preferred_element_type=jnp.float32)
    pre = pre + prep["w1t"] * tT + prep["b1"]
    h = jnp.tanh(pre.astype(hd))
    for wk, bk in (("w2", "b2"), ("w3", "b3")):
        d = jnp.dot(prep[wk], h.astype(jnp.bfloat16),
                    preferred_element_type=jnp.float32)
        h = jnp.tanh(h + d.astype(hd) + prep[bk])
    v = jnp.sum(h.astype(jnp.float32) * prep["wl"], axis=0, keepdims=True) + prep["bl"]
    e = jnp.exp(tT - 1.0)
    psi = jnp.sum(xT * xT, axis=0, keepdims=True)
    return ((1.0 - e) * v + e * psi).T


if __name__ == "__main__":
    # B deliberately not a multiple of 8 to exercise the ragged-batch path.
    B, dim, ns = 10, 4, 32
    hh = 0.1

    key = jax.random.PRNGKey(0)
    kp, kt, kx = jax.random.split(key, 3)

    params = init_params(kp, dim, ns)
    t = jax.random.uniform(kt, (B, 1), jnp.float32, 0.0, 1.0)
    inp = jax.random.normal(kx, (B, dim), jnp.float32)

    prep = prepare_params(params, hh)

    out = vnet_forward(t, inp, prep)
    out = jax.block_until_ready(out)
    assert out.shape == (B, 1)

    # Check against a reference using the same layout / dtype recipe.
    # (Tolerance accounts for Mosaic-vs-XLA transcendental approximation
    # differences, looser when the hidden path runs in bf16.)
    tol = 5e-2 if prep["hidden_dtype"] == jnp.bfloat16 else 1e-2
    ref_m = vnet_reference_matched(t, inp, prep)
    assert jnp.allclose(out, ref_m, atol=tol, rtol=tol), (out, ref_m)

    # Loose check against the pure-f32 PyTorch-equivalent reference
    # (bf16 MXU operands / bf16 hidden math introduce small relative error).
    ref_f32 = vnet_reference(t, inp, params, hh)
    assert jnp.allclose(out, ref_f32, atol=1e-1, rtol=5e-2), (out, ref_f32)

    print("KERNEL_OK")
</pallas_src>

<mosaic_0001>
module attributes {stable_mosaic.version = 11 : i64} {
  func.func @_vnet_kernel(%arg0: i32, %arg1: memref<1x128xf32, #tpu.memory_space<vmem>>, %arg2: memref<4x128xf32, #tpu.memory_space<vmem>>, %arg3: memref<32x4xbf16, #tpu.memory_space<vmem>>, %arg4: memref<32x1xf32, #tpu.memory_space<vmem>>, %arg5: memref<32x1xf32, #tpu.memory_space<vmem>>, %arg6: memref<32x32xbf16, #tpu.memory_space<vmem>>, %arg7: memref<32x1xf32, #tpu.memory_space<vmem>>, %arg8: memref<32x32xbf16, #tpu.memory_space<vmem>>, %arg9: memref<32x1xf32, #tpu.memory_space<vmem>>, %arg10: memref<32x1xf32, #tpu.memory_space<vmem>>, %arg11: memref<1x1xf32, #tpu.memory_space<vmem>>, %arg12: memref<1x128xf32, #tpu.memory_space<vmem>>) attributes {dimension_semantics = [#tpu.dimension_semantics<parallel>], iteration_bounds = array<i64: 1>, scalar_prefetch = 0 : i64, scratch_operands = 0 : i64, tpu.core_type = #tpu.core_type<tc>, window_params = [{transform_indices = @transform_0, window_bounds = array<i64: 1, 128>}, {transform_indices = @transform_1, window_bounds = array<i64: 4, 128>}, {pipeline_mode = #tpu.pipeline_mode<synchronous>, transform_indices = @transform_2, window_bounds = array<i64: 32, 4>}, {pipeline_mode = #tpu.pipeline_mode<synchronous>, transform_indices = @transform_3, window_bounds = array<i64: 32, 1>}, {pipeline_mode = #tpu.pipeline_mode<synchronous>, transform_indices = @transform_4, window_bounds = array<i64: 32, 1>}, {pipeline_mode = #tpu.pipeline_mode<synchronous>, transform_indices = @transform_5, window_bounds = array<i64: 32, 32>}, {pipeline_mode = #tpu.pipeline_mode<synchronous>, transform_indices = @transform_6, window_bounds = array<i64: 32, 1>}, {pipeline_mode = #tpu.pipeline_mode<synchronous>, transform_indices = @transform_7, window_bounds = array<i64: 32, 32>}, {pipeline_mode = #tpu.pipeline_mode<synchronous>, transform_indices = @transform_8, window_bounds = array<i64: 32, 1>}, {pipeline_mode = #tpu.pipeline_mode<synchronous>, transform_indices = @transform_9, window_bounds = array<i64: 32, 1>}, {pipeline_mode = #tpu.pipeline_mode<synchronous>, transform_indices = @transform_10, window_bounds = array<i64: 1, 1>}, {transform_indices = @transform_11, window_bounds = array<i64: 1, 128>}]} {
    %c0 = arith.constant 0 : index
    %c0_0 = arith.constant 0 : index
    %0 = vector.load %arg1[%c0, %c0_0] : memref<1x128xf32, #tpu.memory_space<vmem>>, vector<1x128xf32>
    %c0_1 = arith.constant 0 : index
    %c0_2 = arith.constant 0 : index
    %1 = vector.load %arg2[%c0_1, %c0_2] : memref<4x128xf32, #tpu.memory_space<vmem>>, vector<4x128xf32>
    %c0_3 = arith.constant 0 : index
    %c0_4 = arith.constant 0 : index
    %2 = vector.load %arg3[%c0_3, %c0_4] : memref<32x4xbf16, #tpu.memory_space<vmem>>, vector<32x4xbf16>
    %3 = arith.truncf %1 : vector<4x128xf32> to vector<4x128xbf16>
    %cst = arith.constant dense<0.000000e+00> : vector<32x128xf32>
    %4 = tpu.matmul %2, %3, %cst {dimension_numbers = #tpu.dot_dimension_numbers<[1], [0], [0], [1], [0, 0, 1, 1], [], []>} : vector<32x4xbf16>, vector<4x128xbf16>, vector<32x128xf32> -> vector<32x128xf32>
    %c0_5 = arith.constant 0 : index
    %c0_6 = arith.constant 0 : index
    %5 = vector.load %arg4[%c0_5, %c0_6] : memref<32x1xf32, #tpu.memory_space<vmem>>, vector<32x1xf32>
    %6 = vector.broadcast %5 : vector<32x1xf32> to vector<32x128xf32>
    %7 = vector.broadcast %0 : vector<1x128xf32> to vector<32x128xf32>
    %8 = arith.mulf %6, %7 : vector<32x128xf32>
    %9 = arith.addf %4, %8 : vector<32x128xf32>
    %c0_7 = arith.constant 0 : index
    %c0_8 = arith.constant 0 : index
    %10 = vector.load %arg5[%c0_7, %c0_8] : memref<32x1xf32, #tpu.memory_space<vmem>>, vector<32x1xf32>
    %11 = vector.broadcast %10 : vector<32x1xf32> to vector<32x128xf32>
    %12 = arith.addf %9, %11 : vector<32x128xf32>
    %13 = math.tanh %12 : vector<32x128xf32>
    %c0_9 = arith.constant 0 : index
    %c0_10 = arith.constant 0 : index
    %14 = vector.load %arg6[%c0_9, %c0_10] : memref<32x32xbf16, #tpu.memory_space<vmem>>, vector<32x32xbf16>
    %15 = arith.truncf %13 : vector<32x128xf32> to vector<32x128xbf16>
    %cst_11 = arith.constant dense<0.000000e+00> : vector<32x128xf32>
    %16 = tpu.matmul %14, %15, %cst_11 {dimension_numbers = #tpu.dot_dimension_numbers<[1], [0], [0], [1], [0, 0, 1, 1], [], []>} : vector<32x32xbf16>, vector<32x128xbf16>, vector<32x128xf32> -> vector<32x128xf32>
    %17 = arith.addf %13, %16 : vector<32x128xf32>
    %c0_12 = arith.constant 0 : index
    %c0_13 = arith.constant 0 : index
    %18 = vector.load %arg7[%c0_12, %c0_13] : memref<32x1xf32, #tpu.memory_space<vmem>>, vector<32x1xf32>
    %19 = vector.broadcast %18 : vector<32x1xf32> to vector<32x128xf32>
    %20 = arith.addf %17, %19 : vector<32x128xf32>
    %21 = math.tanh %20 : vector<32x128xf32>
    %c0_14 = arith.constant 0 : index
    %c0_15 = arith.constant 0 : index
    %22 = vector.load %arg8[%c0_14, %c0_15] : memref<32x32xbf16, #tpu.memory_space<vmem>>, vector<32x32xbf16>
    %23 = arith.truncf %21 : vector<32x128xf32> to vector<32x128xbf16>
    %cst_16 = arith.constant dense<0.000000e+00> : vector<32x128xf32>
    %24 = tpu.matmul %22, %23, %cst_16 {dimension_numbers = #tpu.dot_dimension_numbers<[1], [0], [0], [1], [0, 0, 1, 1], [], []>} : vector<32x32xbf16>, vector<32x128xbf16>, vector<32x128xf32> -> vector<32x128xf32>
    %25 = arith.addf %21, %24 : vector<32x128xf32>
    %c0_17 = arith.constant 0 : index
    %c0_18 = arith.constant 0 : index
    %26 = vector.load %arg9[%c0_17, %c0_18] : memref<32x1xf32, #tpu.memory_space<vmem>>, vector<32x1xf32>
    %27 = vector.broadcast %26 : vector<32x1xf32> to vector<32x128xf32>
    %28 = arith.addf %25, %27 : vector<32x128xf32>
    %29 = math.tanh %28 : vector<32x128xf32>
    %c0_19 = arith.constant 0 : index
    %c0_20 = arith.constant 0 : index
    %30 = vector.load %arg10[%c0_19, %c0_20] : memref<32x1xf32, #tpu.memory_space<vmem>>, vector<32x1xf32>
    %31 = vector.broadcast %30 : vector<32x1xf32> to vector<32x128xf32>
    %32 = arith.mulf %29, %31 : vector<32x128xf32>
    %cst_21 = arith.constant dense<0.000000e+00> : vector<128xf32>
    %33 = vector.multi_reduction <add>, %32, %cst_21 [0] : vector<32x128xf32> to vector<128xf32>
    %34 = vector.shape_cast %33 : vector<128xf32> to vector<1x128xf32>
    %c0_22 = arith.constant 0 : index
    %c0_23 = arith.constant 0 : index
    %35 = vector.load %arg11[%c0_22, %c0_23] : memref<1x1xf32, #tpu.memory_space<vmem>>, vector<1x1xf32>
    %36 = vector.broadcast %35 : vector<1x1xf32> to vector<1x128xf32>
    %37 = arith.addf %34, %36 : vector<1x128xf32>
    %cst_24 = arith.constant 1.000000e+00 : f32
    %38 = vector.broadcast %cst_24 : f32 to vector<1x128xf32>
    %39 = arith.subf %0, %38 : vector<1x128xf32>
    %40 = math.exp %39 : vector<1x128xf32>
    %41 = arith.mulf %1, %1 : vector<4x128xf32>
    %cst_25 = arith.constant dense<0.000000e+00> : vector<128xf32>
    %42 = vector.multi_reduction <add>, %41, %cst_25 [0] : vector<4x128xf32> to vector<128xf32>
    %43 = vector.shape_cast %42 : vector<128xf32> to vector<1x128xf32>
    %cst_26 = arith.constant 1.000000e+00 : f32
    %44 = vector.broadcast %cst_26 : f32 to vector<1x128xf32>
    %45 = arith.subf %44, %40 : vector<1x128xf32>
    %46 = arith.mulf %45, %37 : vector<1x128xf32>
    %47 = arith.mulf %40, %43 : vector<1x128xf32>
    %48 = arith.addf %46, %47 : vector<1x128xf32>
    %c0_27 = arith.constant 0 : index
    %c0_28 = arith.constant 0 : index
    %49 = vector.load %arg12[%c0_27, %c0_28] : memref<1x128xf32, #tpu.memory_space<vmem>>, vector<1x128xf32>
    tpu.vector_store %arg12[%c0_27, %c0_28], %48 {strides = array<i32>} : memref<1x128xf32, #tpu.memory_space<vmem>>, vector<1x128xf32>,
    return
  }
  func.func @transform_0(%arg0: i32) -> (i32, i32) {
    %c0_i32 = arith.constant 0 : i32
    %c0_i32_0 = arith.constant 0 : i32
    return %c0_i32, %arg0 : i32, i32
  }
  func.func @transform_1(%arg0: i32) -> (i32, i32) {
    %c0_i32 = arith.constant 0 : i32
    %c0_i32_0 = arith.constant 0 : i32
    return %c0_i32, %arg0 : i32, i32
  }
  func.func @transform_2(%arg0: i32) -> (i32, i32) {
    %c0_i32 = arith.constant 0 : i32
    %c0_i32_0 = arith.constant 0 : i32
    %c0_i32_1 = arith.constant 0 : i32
    return %c0_i32, %c0_i32_0 : i32, i32
  }
  func.func @transform_3(%arg0: i32) -> (i32, i32) {
    %c0_i32 = arith.constant 0 : i32
    %c0_i32_0 = arith.constant 0 : i32
    %c0_i32_1 = arith.constant 0 : i32
    return %c0_i32, %c0_i32_0 : i32, i32
  }
  func.func @transform_4(%arg0: i32) -> (i32, i32) {
    %c0_i32 = arith.constant 0 : i32
    %c0_i32_0 = arith.constant 0 : i32
    %c0_i32_1 = arith.constant 0 : i32
    return %c0_i32, %c0_i32_0 : i32, i32
  }
  func.func @transform_5(%arg0: i32) -> (i32, i32) {
    %c0_i32 = arith.constant 0 : i32
    %c0_i32_0 = arith.constant 0 : i32
    %c0_i32_1 = arith.constant 0 : i32
    return %c0_i32, %c0_i32_0 : i32, i32
  }
  func.func @transform_6(%arg0: i32) -> (i32, i32) {
    %c0_i32 = arith.constant 0 : i32
    %c0_i32_0 = arith.constant 0 : i32
    %c0_i32_1 = arith.constant 0 : i32
    return %c0_i32, %c0_i32_0 : i32, i32
  }
  func.func @transform_7(%arg0: i32) -> (i32, i32) {
    %c0_i32 = arith.constant 0 : i32
    %c0_i32_0 = arith.constant 0 : i32
    %c0_i32_1 = arith.constant 0 : i32
    return %c0_i32, %c0_i32_0 : i32, i32
  }
  func.func @transform_8(%arg0: i32) -> (i32, i32) {
    %c0_i32 = arith.constant 0 : i32
    %c0_i32_0 = arith.constant 0 : i32
    %c0_i32_1 = arith.constant 0 : i32
    return %c0_i32, %c0_i32_0 : i32, i32
  }
  func.func @transform_9(%arg0: i32) -> (i32, i32) {
    %c0_i32 = arith.constant 0 : i32
    %c0_i32_0 = arith.constant 0 : i32
    %c0_i32_1 = arith.constant 0 : i32
    return %c0_i32, %c0_i32_0 : i32, i32
  }
  func.func @transform_10(%arg0: i32) -> (i32, i32) {
    %c0_i32 = arith.constant 0 : i32
    %c0_i32_0 = arith.constant 0 : i32
    %c0_i32_1 = arith.constant 0 : i32
    return %c0_i32, %c0_i32_0 : i32, i32
  }
  func.func @transform_11(%arg0: i32) -> (i32, i32) {
    %c0_i32 = arith.constant 0 : i32
    %c0_i32_0 = arith.constant 0 : i32
    return %c0_i32, %arg0 : i32, i32
  }
}

</mosaic_0001>

<bundles_post_ra>
// kernel: tpu_custom_call.1
= control target key start
LH: loop header
LB: loop body
LE: loop exit
PB: predicated region body
PF: predicated region fallthrough
CT: control target
= control target key end

     0   :  { %s768_s0 = inlined_call_operand.vmem [shape: f32[1,128], index: 0, kind: input, shape index: {}]   ;;  %s769_s1 = inlined_call_operand.vmem [shape: f32[4,128], index: 1, kind: input, shape index: {}]   ;;  %s770_s2 = inlined_call_operand.vmem [shape: bf16[32,4], index: 2, kind: input, shape index: {}]   ;;  %s771_s3 = inlined_call_operand.vmem [shape: f32[32,1], index: 3, kind: input, shape index: {}]   ;;  %s772_s4 = inlined_call_operand.vmem [shape: f32[32,1], index: 4, kind: input, shape index: {}]   ;;  %s773_s5 = inlined_call_operand.vmem [shape: bf16[32,32], index: 5, kind: input, shape index: {}]   ;;  %s774_s6 = inlined_call_operand.vmem [shape: f32[32,1], index: 6, kind: input, shape index: {}]   ;;  %s775_s7 = inlined_call_operand.vmem [shape: bf16[32,32], index: 7, kind: input, shape index: {}]   ;;  %s776_s8 = inlined_call_operand.vmem [shape: f32[32,1], index: 8, kind: input, shape index: {}]   ;;  %s777_s9 = inlined_call_operand.vmem [shape: f32[32,1], index: 9, kind: input, shape index: {}]   ;;  %s778_s10 = inlined_call_operand.<no memory space> [shape: f32[1,1], index: 10, kind: input, shape index: {}]   ;;  %s779_s11 = inlined_call_operand.hbm [shape: f32[1,128], index: 11, kind: output, shape index: {}]  }
   0x1   :  { %v16_v0 = vstv %s778_s10 }
   0x2   :  { %17 = vst [vmem:[#allocation2] sm:$0x1] %v16_v0 }
   0x3   :  { %v654_v1 = vld [vmem:[%s769_s1] sm:$0xf]  ;;  %vm100_vm0 = vcmask 1041408   ;;  %vm93_vm1 = vcmask 31744   ;;  %v531_v6 = vld [vmem:[%s770_s2 + $0x8] sm:$0xff]   ;;  %v51_v7 = vld [vmem:[%s771_s3 + $0x10] sm:$0xff] }
   0x4   :  { %v48_v2 = vpack.c.bf16 %v654_v1, %v654_v1  ;;  %v530_v3 = vld [vmem:[%s770_s2] sm:$0xff]   ;;  %v586_v8 = vmov 0   ;;  %v50_v9 = vld [vmem:[%s771_s3 + $0x8] sm:$0xff]  ;;  %v52_v10 = vld [vmem:[%s771_s3 + $0x18] sm:$0xff] }
   0x5   :  { %v49_v4 = vld [vmem:[%s771_s3] sm:$0xff]  ;;  %505 = vmatprep.mubr.msk.bf16.mxu0 %vm93_vm1, %v530_v3  ;;  %528 = vset.pattern.permute.xlu0 %v586_v8  ;;  %v154_v12 = vld [vmem:[%s772_s4 + $0x8] sm:$0xff] }
   0x6   :  { %525 = vmatprep.subr.msk.bf16.mxu0 %vm100_vm0, %v48_v2  ;;  %v102_v5 = vsel %vm100_vm0, %v48_v2, 0  ;;  %55 = vperm.xlu0 %528, %v49_v4   ;;  %v153_v11 = vld [vmem:[%s772_s4] sm:$0xff] }
   0x7   :  { %504 = vmatpush3.bf16.msra.mxu0 %v102_v5  ;;  %529 = vset.pattern.permute.xlu1 %v586_v8 }
   0x8   :  { %65 = vperm.xlu1 %529, %v51_v7  }
   0xa   :  { %506 = vmatmul.mubr.msk.bf16.vlgmr.msra.gmra.mrb[0].mxu0 %vm93_vm1, %v531_v6  ;;  %60 = vperm.xlu0 %528, %v50_v9  }
   0xc   :  { %70 = vperm.xlu1 %529, %v52_v10  }
   0xe   :  { %159 = vperm.xlu0 %528, %v153_v11  }
   0xf   :  { %18 = vsyncpa [#allocation4], 0  ;;  %v155_v13 = vld [vmem:[%s772_s4 + $0x10] sm:$0xff]  ;;  %v156_v14 = vld [vmem:[%s772_s4 + $0x18] sm:$0xff]  ;;  %vm201_vm2 = vcmask 261120   ;;  %v74_v29 = vlaneseq  ;;  %vm452_vm3 = vcmask 1043456  }
  0x10   :  { %164 = vperm.xlu1 %529, %v154_v12   ;;  %v261_v15 = vld [vmem:[%s774_s6] sm:$0xff]  ;;  %v262_v16 = vld [vmem:[%s774_s6 + $0x8] sm:$0xff]  ;;  %v263_v17 = vld [vmem:[%s774_s6 + $0x10] sm:$0xff] }
  0x11   :  { %v264_v18 = vld [vmem:[%s774_s6 + $0x18] sm:$0xff]  ;;  %v368_v19 = vld [vmem:[%s776_s8] sm:$0xff]  ;;  %v369_v20 = vld [vmem:[%s776_s8 + $0x8] sm:$0xff]  ;;  %v728_v30 = vshrl.u32 %v74_v29, 7 }
  0x12   :  { %169 = vperm.xlu0 %528, %v155_v13   ;;  %v370_v21 = vld [vmem:[%s776_s8 + $0x10] sm:$0xff]  ;;  %v371_v22 = vld [vmem:[%s776_s8 + $0x18] sm:$0xff]  ;;  %v400_v23 = vld [vmem:[%s777_s9] sm:$0xff] }
  0x13   :  { %v401_v24 = vld [vmem:[%s777_s9 + $0x8] sm:$0xff]  ;;  %v402_v25 = vld [vmem:[%s777_s9 + $0x10] sm:$0xff]  ;;  %v403_v26 = vld [vmem:[%s777_s9 + $0x18] sm:$0xff]  ;;  %v76_v33 = vsub.s32 0, %v728_v30 }
  0x14   :  { %174 = vperm.xlu1 %529, %v156_v14   ;;  %v437_v27 = vld [vmem:[#allocation2] sm:$0x1]  ;;  %v533_v0 = vld [vmem:[%s773_s5 + $0x8] sm:$0xff]  }
  0x15   :  { %v532_v28 = vld [vmem:[%s773_s5] sm:$0xff]  }
  0x16   :  { %267 = vperm.xlu0 %528, %v261_v15   ;;  %513 = vmatprep.mubr.msk.bf16.mxu1 %vm201_vm2, %v532_v28  ;;  %v734_v34 = vld [vmem:[%s768_s0] sm:$0x1] }
  0x17   :  { %v77_v37 = vrot.slane %v734_v34, %v76_v33  ;;  %v534_v2 = vld [vmem:[%s775_s7] sm:$0xff]   ;;  %v491_v28 = vadd.f32 -1.0, %v734_v34 }
  0x18   :  { %272 = vperm.xlu1 %529, %v262_v16   ;;  %521 = vmatprep.mubr.msk.bf16.mxu0 %vm201_vm2, %v534_v2 }
  0x1a   :  { %277 = vperm.xlu0 %528, %v263_v17  }
  0x1c   :  { %282 = vperm.xlu1 %529, %v264_v18  }
  0x1e   :  { %374 = vperm.xlu0 %528, %v368_v19  }
  0x20   :  { %379 = vperm.xlu1 %529, %v369_v20  }
  0x22   :  { %384 = vperm.xlu0 %528, %v370_v21  }
  0x24   :  { %389 = vperm.xlu1 %529, %v371_v22  }
  0x26   :  { %406 = vperm.xlu0 %528, %v400_v23  }
  0x28   :  { %411 = vperm.xlu1 %529, %v401_v24  }
  0x2a   :  { %416 = vperm.xlu0 %528, %v402_v25   ;;  %v535_v25 = vld [vmem:[%s775_s7 + $0x8] sm:$0xff]   ;;  %s587_s7 = smov [#allocation3]  }
  0x2b   :  { %s471_s23 = sshll.u32 %s587_s7, 4  ;;  %s472_s23 = int_to_ptr.vmem [resolvable:$true] %s471_s23 }
  0x2c   :  { %421 = vperm.xlu1 %529, %v403_v26   ;;  %v451_v26 = vmul.f32 %v654_v1, %v654_v1  ;;  %s562_s24 = scalar_lea.vmem %s472_s23, 16  ;;  %s566_s10 = scalar_lea.vmem %s472_s23, 32 }
  0x2d   :  { %p563_p0 = scmp.ne.s32.totalorder %s472_s23, %s562_s24  ;;  %p567_p1 = scmp.lt.s32.totalorder %s472_s23, %s472_s23 }
  0x2e   :  { %440 = vperm.xlu0 %528, %v437_v27   ;;  %v453_v27 = vsel %vm452_vm3, %v451_v26, 0.0  ;;  %p568_p2 = scmp.lt.s32.totalorder %s566_s10, %s562_s24 }
  0x2f   :  { %v454_v29 = vrot.slane %v453_v27, 4 }
  0x30   :  { %p569_p3 = por %p568_p2, %p567_p1 }
  0x32   :  { %p570_p4 = pnand %p569_p3, %p563_p0 }
  0x85   :  { %v56_v32 = vpop.permute.xlu0 %55 }
  0x86   :  { %v79_v41 = vmul.f32 %v77_v37, %v56_v32  ;;  %v455_v32 = vadd.f32 %v454_v29, %v453_v27 }
  0x87   :  { %v66_v31 = vpop.permute.xlu1 %65 }
  0x88   :  { %v81_v38 = vmul.f32 %v77_v37, %v66_v31  ;;  %v449_v31 = vmul.f32 1.442695, %v491_v28 }
  0x89   :  { %v61_v36 = vpop.permute.xlu0 %60 }
  0x8a   :  { %v80_v45 = vmul.f32 %v77_v37, %v61_v36 }
  0x8b   :  { %v71_v35 = vpop.permute.xlu1 %70 }
  0x8c   :  { %v82_v43 = vmul.f32 %v77_v37, %v71_v35  ;;  %v456_v35 = vrot.slane %v455_v32, 2 }
  0x8d   :  { %v160_v40 = vpop.permute.xlu0 %159 }
  0x8e   :  { %v457_v36 = vadd.f32 %v456_v35, %v455_v32 }
  0x8f   :  { %v165_v39 = vpop.permute.xlu1 %164 }
  0x90   :  { %v458_v37 = vrot.slane %v457_v36, 1 }
  0x91   :  { %v170_v54 = vpop.permute.xlu0 %169 }
  0x93   :  { %v175_v51 = vpop.permute.xlu1 %174 }
  0x95   :  { %v268_v4 = vpop.permute.xlu0 %267 }
  0x97   :  { %v273_v3 = vpop.permute.xlu1 %272 }
  0x99   :  { %v278_v15 = vpop.permute.xlu0 %277 }
  0x9b   :  { %v283_v12 = vpop.permute.xlu1 %282 }
  0xdd   :  { %v507_v42 = vpop.f32.mrb[0].mxu0 }
  0xde   :  { %v138_v44 = vpop.f32.mrb[1].mxu0  ;;  %v147_v46 = vadd.f32 %v507_v42, %v81_v38  ;;  %v459_v38 = vadd.f32 %v458_v37, %v457_v36  ;;  %v380_v42 = vpop.permute.xlu1 %379 }
  0xdf   :  { %v139_v47 = vadd.f32 %v138_v44, %v79_v41  ;;  %v508_v48 = vpop.f32.mrb[2].mxu0  ;;  %v375_v41 = vpop.permute.xlu0 %374 }
  0xe0   :  { %v150_v49 = vadd.f32 %v508_v48, %v82_v43  ;;  %v141_v50 = vpop.f32.mrb[3].mxu0  ;;  %v179_v56 = vadd.f32 %v170_v54, %v147_v46 }
  0xe1   :  { %v177_v52 = vadd.f32 %v160_v40, %v139_v47  ;;  %v142_v53 = vadd.f32 %v141_v50, %v80_v45 }
  0xe2   :  { %v180_v55 = vadd.f32 %v175_v51, %v150_v49 }
  0xe3   :  { %536 = vtanh.f32 %v177_v52  ;;  %v178_v57 = vadd.f32 %v165_v39, %v142_v53  ;;  %v385_v1 = vpop.permute.xlu0 %384  ;;  %v390_v52 = vpop.permute.xlu1 %389 }
  0xe4   :  { %538 = vtanh.f32 %v180_v55 }
  0xe5   :  { %540 = vtanh.f32 %v178_v57 }
  0xe6   :  { %542 = vtanh.f32 %v179_v56 }
  0xe7   :  { %v407_v55 = vpop.permute.xlu0 %406  ;;  %v412_v57 = vpop.permute.xlu1 %411 }
  0xed   :  { %v537_v58 = vpop.eup %536 }
  0xee   :  { %v539_v59 = vpop.eup %538 }
  0xef   :  { %v541_v60 = vpop.eup %540 }
  0xf0   :  { %v189_v61 = vpack.c.bf16 %v541_v60, %v537_v58  ;;  %v543_v62 = vpop.eup %542 }
  0xf1   :  { %v190_v63 = vpack.c.bf16 %v539_v59, %v543_v62 }
  0xf2   :  { %509 = vmatprep.subr.bf16.mxu1 %v189_v61 }
  0xf3   :  { %510 = vmatpush3.bf16.msra.mxu1 %v189_v61 }
  0xf4   :  { %511 = vmatprep.subr.bf16.mxu1 %v190_v63 }
  0xf7   :  { %512 = vmatpush3.bf16.msra.mxu1 %v190_v63  ;;  %v417_v63 = vpop.permute.xlu0 %416 }
  0xfa   :  { %514 = vmatmul.mubr.msk.bf16.vlgmr.msra.gmra.mrb[0].mxu1 %vm201_vm2, %v533_v0 }
 0x1cd   :  { %v515_v5 = vpop.f32.mrb[0].mxu1 }
 0x1ce   :  { %v242_v6 = vpop.f32.mrb[1].mxu1  ;;  %v259_v7 = vadd.f32 %v543_v62, %v515_v5 }
 0x1cf   :  { %v257_v8 = vadd.f32 %v537_v58, %v242_v6  ;;  %v516_v9 = vpop.f32.mrb[2].mxu1 }
 0x1d0   :  { %v260_v10 = vadd.f32 %v539_v59, %v516_v9  ;;  %v245_v11 = vpop.f32.mrb[3].mxu1  ;;  %v287_v17 = vadd.f32 %v278_v15, %v259_v7 }
 0x1d1   :  { %v285_v13 = vadd.f32 %v268_v4, %v257_v8  ;;  %v258_v14 = vadd.f32 %v541_v60, %v245_v11  ;;  %v441_v11 = vpop.permute.xlu0 %440 }
 0x1d2   :  { %v288_v16 = vadd.f32 %v283_v12, %v260_v10 }
 0x1d3   :  { %544 = vtanh.f32 %v285_v13  ;;  %v286_v18 = vadd.f32 %v273_v3, %v258_v14  ;;  %v422_v3 = vpop.permute.xlu1 %421  ;;  %v446_v13 = vrot.slane %v441_v11, %v76_v33 }
 0x1d4   :  { %546 = vtanh.f32 %v288_v16 }
 0x1d5   :  { %548 = vtanh.f32 %v286_v18 }
 0x1d6   :  { %550 = vtanh.f32 %v287_v17 }
 0x1d7   :  { %552 = vpow2.f32 %v449_v31 }
 0x1dd   :  { %v545_v19 = vpop.eup %544 }
 0x1de   :  { %v547_v20 = vpop.eup %546 }
 0x1df   :  { %v549_v21 = vpop.eup %548 }
 0x1e0   :  { %v297_v22 = vpack.c.bf16 %v549_v21, %v545_v19  ;;  %v551_v23 = vpop.eup %550 }
 0x1e1   :  { %v298_v24 = vpack.c.bf16 %v547_v20, %v551_v23  ;;  %v553_v39 = vpop.eup %552 }
 0x1e2   :  { %517 = vmatprep.subr.bf16.mxu0 %v297_v22  ;;  %v462_v40 = vmul.f32 %v553_v39, %v459_v38  ;;  %v460_v15 = vsub.f32 1.0, %v553_v39 }
 0x1e3   :  { %518 = vmatpush3.bf16.msra.mxu0 %v297_v22 }
 0x1e4   :  { %519 = vmatprep.subr.bf16.mxu0 %v298_v24 }
 0x1e7   :  { %520 = vmatpush3.bf16.msra.mxu0 %v298_v24 }
 0x1ea   :  { %522 = vmatmul.mubr.msk.bf16.vlgmr.msra.gmra.mrb[4].mxu0 %vm201_vm2, %v535_v25 }
 0x2bd   :  { %v523_v43 = vpop.f32.mrb[4].mxu0 }
 0x2be   :  { %v366_v44 = vadd.f32 %v551_v23, %v523_v43  ;;  %v349_v45 = vpop.f32.mrb[5].mxu0 }
 0x2bf   :  { %v364_v46 = vadd.f32 %v545_v19, %v349_v45  ;;  %v524_v47 = vpop.f32.mrb[6].mxu0 }
 0x2c0   :  { %v394_v48 = vadd.f32 %v385_v1, %v366_v44  ;;  %v367_v34 = vadd.f32 %v547_v20, %v524_v47  ;;  %v352_v49 = vpop.f32.mrb[7].mxu0 }
 0x2c1   :  { %v392_v50 = vadd.f32 %v375_v41, %v364_v46  ;;  %v365_v51 = vadd.f32 %v549_v21, %v352_v49 }
 0x2c2   :  { %v395_v53 = vadd.f32 %v390_v52, %v367_v34 }
 0x2c3   :  { %554 = vtanh.f32 %v392_v50  ;;  %v393_v54 = vadd.f32 %v380_v42, %v365_v51 }
 0x2c4   :  { %556 = vtanh.f32 %v394_v48 }
 0x2c5   :  { %558 = vtanh.f32 %v393_v54 }
 0x2c6   :  { %560 = vtanh.f32 %v395_v53 }
 0x2cd   :  { %v555_v56 = vpop.eup %554 }
 0x2ce   :  { %v557_v58 = vpop.eup %556  ;;  %v424_v60 = vmul.f32 %v555_v56, %v407_v55 }
 0x2cf   :  { %v559_v59 = vpop.eup %558  ;;  %v426_v0 = vmul.f32 %v557_v58, %v417_v63 }
 0x2d0   :  { %v425_v61 = vmul.f32 %v559_v59, %v412_v57  ;;  %v561_v62 = vpop.eup %560 }
 0x2d1   :  { %v427_v4 = vmul.f32 %v561_v62, %v422_v3 }
 0x2d2   :  { %v428_v2 = vadd.f32 %v425_v61, %v424_v60 }
 0x2d4   :  { %v429_v5 = vadd.f32 %v428_v2, %v426_v0 }
 0x2d6   :  { %v430_v6 = vadd.f32 %v429_v5, %v427_v4 }
 0x2d8   :  { %v431_v7 = vrot.slane %v430_v6, 4 }
 0x2da   :  { %v432_v8 = vadd.f32 %v431_v7, %v430_v6 }
 0x2dc   :  { %v433_v9 = vrot.slane %v432_v8, 2 }
 0x2de   :  { %v434_v10 = vadd.f32 %v433_v9, %v432_v8 }
 0x2e0   :  { %v435_v12 = vrot.slane %v434_v10, 1 }
 0x2e2   :  { %v436_v14 = vadd.f32 %v435_v12, %v434_v10 }
 0x2e4   :  { %v447_v16 = vadd.f32 %v446_v13, %v436_v14 }
 0x2e6   :  { %v461_v17 = vmul.f32 %v460_v15, %v447_v16 }
 0x2e8   :  { %v463_v18 = vadd.f32 %v462_v40, %v461_v17 }
 0x2ea   :  { %464 = vst [vmem:[#allocation3] sm:$0x1] %v463_v18 }
 0x2eb   :  { %573 = shalt.err (!%p570_p4)
}
 0x2ec   :  { %s574_s1 = scalar_lea.hbm %s779_s11, 16 }
 0x2ed   :  { %p575_p5 = scmp.ne.s32.totalorder %s779_s11, %s574_s1  ;;  %p578_p6 = scmp.lt.u32.totalorder %s574_s1, %s779_s11 }
 0x2ef   :  { %p580_p7 = pnand %p578_p6, %p575_p5 }
 0x2f1   :  { %583 = shalt.err (!%p580_p7)
}
 0x2f2   :  { %474 = dma.vmem_to_hbm [thread:$0]  %s472_s23, 16, %s779_s11, [#allocation4]  }
 0x2f3   :  { %584 = dma.done.wait [#allocation4], 16  }
 0x2f4   :  { %585 = vsyncadd [#allocation4], 4294967280 }
 0x2f5   :  { %478 = vsyncpa [#allocation4], 1 }

</bundles_post_ra>
